<compile_context>
chip_gen: v7x
topology: tpu7x:2x2x1
jax: 0.10.0
libtpu: 0.0.40
codegen_flags: <defaults>
</compile_context>

<pallas_src>
import functools

import jax
import jax.numpy as jnp
from jax.experimental import pallas as pl
from jax.experimental.pallas import tpu as pltpu


def _cdiv(a, b):
    return (a + b - 1) // b


def _round_up(n, m):
    return _cdiv(n, m) * m


def _leaky_relu(x, slope=0.1):
    return jnp.where(x > 0, x, slope * x)


def _mlp_kernel(x_ref, w1_ref, b1_ref, w2_ref, b2_ref, w3_ref, b3_ref, o_ref):
    """Whole discriminator MLP for one batch tile.

    x_ref:  (tb, D)      f32 (cast to compute dtype in-kernel)
    w1_ref: (D, H1p)     compute dtype   b1_ref: (1, H1p) f32
    w2_ref: (H1p, H2p)   compute dtype   b2_ref: (1, H2p) f32
    w3_ref: (H2p, 1)     compute dtype (final Linear weight as a column)
    b3_ref: (1,)         f32 scalar in SMEM
    o_ref:  (tb, 1)      f32
    """
    cdt = w1_ref.dtype
    x = x_ref[...].astype(cdt)          # in-kernel cast; hidden under the MXU
    h = jnp.dot(x, w1_ref[...], preferred_element_type=jnp.float32)
    h = _leaky_relu(h + b1_ref[...])
    h = jnp.dot(h.astype(cdt), w2_ref[...], preferred_element_type=jnp.float32)
    h = _leaky_relu(h + b2_ref[...])
    # Final Linear(H2, 1): N=1 MXU matmul -> result already in (sublane, 1)
    # layout; no cross-lane XLU reduce, no relayout of tb scalars.
    y = jnp.dot(h.astype(cdt), w3_ref[...], preferred_element_type=jnp.float32)
    o_ref[...] = (y + b3_ref[0]).astype(o_ref.dtype)


@functools.partial(jax.jit, static_argnames=("tb", "compute_dtype"))
def discriminator_forward(x, w1, b1, w2, b2, w3, b3, *, tb=2048,
                          compute_dtype=jnp.bfloat16):
    """Pallas forward: returns network(x).view(-1), shape (batch,)."""
    B, D = x.shape
    H1 = w1.shape[1]
    H2 = w2.shape[1]

    # Lane-friendly padded hidden widths (zero padding preserves the math:
    # padded columns produce 0, LeakyReLU(0)=0, and padded weight rows are 0).
    H1p = _round_up(H1, 128)
    H2p = _round_up(H2, 128)

    # Adaptive batch tile: minimize zero padding, and for batches large enough
    # guarantee >= 2 tiles so the "parallel" axis can shard across v7x's 2 TCs.
    tb = max(int(tb), 128)
    n_tiles = _cdiv(B, tb)
    if B > 256:
        n_tiles = max(n_tiles, 2)
    tb_eff = _round_up(_cdiv(B, n_tiles), 128)
    G = _cdiv(B, tb_eff)
    Bp = G * tb_eff

    xp = x if Bp == B else jnp.pad(x, ((0, Bp - B), (0, 0)))
    if xp.dtype != jnp.float32:
        xp = xp.astype(jnp.float32)      # bf16 cast happens in-kernel

    w1p = jnp.pad(w1, ((0, 0), (0, H1p - H1))).astype(compute_dtype)
    b1p = jnp.pad(b1, ((0, 0), (0, H1p - H1))).astype(jnp.float32)
    w2p = jnp.pad(w2, ((0, H1p - H1), (0, H2p - H2))).astype(compute_dtype)
    b2p = jnp.pad(b2, ((0, 0), (0, H2p - H2))).astype(jnp.float32)
    w3col = jnp.pad(w3.reshape(H2, 1), ((0, H2p - H2), (0, 0))).astype(compute_dtype)
    b3s = b3.reshape(-1).astype(jnp.float32)                         # (1,) -> SMEM

    w_bytes = jnp.dtype(compute_dtype).itemsize
    cost = pl.CostEstimate(
        flops=2 * Bp * (D * H1p + H1p * H2p + H2p),
        transcendentals=0,
        bytes_accessed=(Bp * D * 4                                   # x (f32)
                        + (D * H1p + H1p * H2p + H2p) * w_bytes      # W1, W2, W3
                        + (H1p + H2p + 1) * 4                        # b1, b2, b3
                        + Bp * 4),                                   # output
    )

    out = pl.pallas_call(
        _mlp_kernel,
        out_shape=jax.ShapeDtypeStruct((Bp, 1), jnp.float32),
        grid_spec=pltpu.PrefetchScalarGridSpec(
            num_scalar_prefetch=0,
            grid=(G,),
            in_specs=[
                pl.BlockSpec((tb_eff, D), lambda i: (i, 0)),    # x tile over batch
                pl.BlockSpec((D, H1p), lambda i: (0, 0)),       # W1 (VMEM resident)
                pl.BlockSpec((1, H1p), lambda i: (0, 0)),       # b1
                pl.BlockSpec((H1p, H2p), lambda i: (0, 0)),     # W2 (VMEM resident)
                pl.BlockSpec((1, H2p), lambda i: (0, 0)),       # b2
                pl.BlockSpec((H2p, 1), lambda i: (0, 0)),       # W3 column
                pl.BlockSpec(memory_space=pltpu.MemorySpace.SMEM),  # b3 scalar
            ],
            out_specs=pl.BlockSpec((tb_eff, 1), lambda i: (i, 0)),
        ),
        compiler_params=pltpu.CompilerParams(
            dimension_semantics=("parallel",),   # batch axis shards across TCs
        ),
        cost_estimate=cost,
    )(xp, w1p, b1p, w2p, b2p, w3col, b3s)

    return out[:B, 0]   # == .view(-1), drop batch padding


def _reference_forward(x, w1, b1, w2, b2, w3, b3):
    h = _leaky_relu(x @ w1 + b1[0])
    h = _leaky_relu(h @ w2 + b2[0])
    return (h @ w3 + b3[0]).reshape(-1)


def _make_params(key, dim):
    """Deterministic synthetic init. Layer sizes follow __create_sequential
    with layer_number=2, layer_expansion=1: [32, 21, 10] -> 1."""
    layer_number = 2
    layer_sizes = [i / (layer_number + 1) for i in reversed(range(1, layer_number + 2))]
    dims = [int(s * dim) for s in layer_sizes] + [1]

    params = []
    keys = jax.random.split(key, 2 * (len(dims) - 1))
    for li in range(len(dims) - 1):
        fan_in, fan_out = dims[li], dims[li + 1]
        scale = 1.0 / jnp.sqrt(jnp.float32(fan_in))
        w = jax.random.uniform(keys[2 * li], (fan_in, fan_out),
                               jnp.float32, -scale, scale)
        b = jax.random.uniform(keys[2 * li + 1], (1, fan_out),
                               jnp.float32, -scale, scale)
        params += [w, b]
    return params


if __name__ == "__main__":
    key = jax.random.PRNGKey(0)
    k_x, k_p = jax.random.split(key)

    batch, dim = 16, 32
    x = jax.random.normal(k_x, (batch, dim), dtype=jnp.float32)
    w1, b1, w2, b2, w3, b3 = _make_params(k_p, dim)

    y_ref = _reference_forward(x, w1, b1, w2, b2, w3, b3)

    # f32 compute path: tight numerical check.
    y32 = jax.block_until_ready(
        discriminator_forward(x, w1, b1, w2, b2, w3, b3,
                              compute_dtype=jnp.float32))
    assert y32.shape == (batch,)
    assert jnp.allclose(y32, y_ref, atol=1e-5, rtol=1e-5)

    # Default bf16 compute path (f32 accumulation): loose check.
    y = jax.block_until_ready(discriminator_forward(x, w1, b1, w2, b2, w3, b3))
    assert y.shape == (batch,)
    assert jnp.allclose(y, y_ref, atol=3e-2, rtol=3e-2)

    # TODO(synk): score_gen/score_train/decide (MSE scoring, no_grad) are
    # training/eval helpers, not part of forward(), so they are not kernelized.

    print("KERNEL_OK")
</pallas_src>

<mosaic_0001>
module attributes {stable_mosaic.version = 11 : i64} {
  func.func @_mlp_kernel(%arg0: i32, %arg1: memref<128x32xf32, #tpu.memory_space<vmem>>, %arg2: memref<32x128xf32, #tpu.memory_space<vmem>>, %arg3: memref<1x128xf32, #tpu.memory_space<vmem>>, %arg4: memref<128x128xf32, #tpu.memory_space<vmem>>, %arg5: memref<1x128xf32, #tpu.memory_space<vmem>>, %arg6: memref<128x1xf32, #tpu.memory_space<vmem>>, %arg7: memref<1xf32, #tpu.memory_space<smem>>, %arg8: memref<128x1xf32, #tpu.memory_space<vmem>>) attributes {dimension_semantics = [#tpu.dimension_semantics<parallel>], iteration_bounds = array<i64: 1>, scalar_prefetch = 0 : i64, scratch_operands = 0 : i64, tpu.core_type = #tpu.core_type<tc>, window_params = [{transform_indices = @transform_0, window_bounds = array<i64: 128, 32>}, {pipeline_mode = #tpu.pipeline_mode<synchronous>, transform_indices = @transform_1, window_bounds = array<i64: 32, 128>}, {pipeline_mode = #tpu.pipeline_mode<synchronous>, transform_indices = @transform_2, window_bounds = array<i64: 1, 128>}, {pipeline_mode = #tpu.pipeline_mode<synchronous>, transform_indices = @transform_3, window_bounds = array<i64: 128, 128>}, {pipeline_mode = #tpu.pipeline_mode<synchronous>, transform_indices = @transform_4, window_bounds = array<i64: 1, 128>}, {pipeline_mode = #tpu.pipeline_mode<synchronous>, transform_indices = @transform_5, window_bounds = array<i64: 128, 1>}, {transform_indices = @transform_6, window_bounds = array<i64: 1>}, {transform_indices = @transform_7, window_bounds = array<i64: 128, 1>}]} {
    %c0 = arith.constant 0 : index
    %c0_0 = arith.constant 0 : index
    %0 = vector.load %arg1[%c0, %c0_0] : memref<128x32xf32, #tpu.memory_space<vmem>>, vector<128x32xf32>
    %c0_1 = arith.constant 0 : index
    %c0_2 = arith.constant 0 : index
    %1 = vector.load %arg2[%c0_1, %c0_2] : memref<32x128xf32, #tpu.memory_space<vmem>>, vector<32x128xf32>
    %cst = arith.constant dense<0.000000e+00> : vector<128x128xf32>
    %2 = tpu.matmul %0, %1, %cst {dimension_numbers = #tpu.dot_dimension_numbers<[1], [0], [0], [1], [0, 0, 1, 1], [], []>} : vector<128x32xf32>, vector<32x128xf32>, vector<128x128xf32> -> vector<128x128xf32>
    %c0_3 = arith.constant 0 : index
    %c0_4 = arith.constant 0 : index
    %3 = vector.load %arg3[%c0_3, %c0_4] : memref<1x128xf32, #tpu.memory_space<vmem>>, vector<1x128xf32>
    %4 = vector.broadcast %3 : vector<1x128xf32> to vector<128x128xf32>
    %5 = arith.addf %2, %4 : vector<128x128xf32>
    %cst_5 = arith.constant 0.000000e+00 : f32
    %6 = vector.broadcast %cst_5 : f32 to vector<128x128xf32>
    %7 = arith.cmpf ogt, %5, %6 : vector<128x128xf32>
    %cst_6 = arith.constant 1.000000e-01 : f32
    %8 = vector.broadcast %cst_6 : f32 to vector<128x128xf32>
    %9 = arith.mulf %8, %5 : vector<128x128xf32>
    %10 = arith.select %7, %5, %9 : vector<128x128xi1>, vector<128x128xf32>
    %c0_7 = arith.constant 0 : index
    %c0_8 = arith.constant 0 : index
    %11 = vector.load %arg4[%c0_7, %c0_8] : memref<128x128xf32, #tpu.memory_space<vmem>>, vector<128x128xf32>
    %cst_9 = arith.constant dense<0.000000e+00> : vector<128x128xf32>
    %12 = tpu.matmul %10, %11, %cst_9 {dimension_numbers = #tpu.dot_dimension_numbers<[1], [0], [0], [1], [0, 0, 1, 1], [], []>} : vector<128x128xf32>, vector<128x128xf32>, vector<128x128xf32> -> vector<128x128xf32>
    %c0_10 = arith.constant 0 : index
    %c0_11 = arith.constant 0 : index
    %13 = vector.load %arg5[%c0_10, %c0_11] : memref<1x128xf32, #tpu.memory_space<vmem>>, vector<1x128xf32>
    %14 = vector.broadcast %13 : vector<1x128xf32> to vector<128x128xf32>
    %15 = arith.addf %12, %14 : vector<128x128xf32>
    %cst_12 = arith.constant 0.000000e+00 : f32
    %16 = vector.broadcast %cst_12 : f32 to vector<128x128xf32>
    %17 = arith.cmpf ogt, %15, %16 : vector<128x128xf32>
    %cst_13 = arith.constant 1.000000e-01 : f32
    %18 = vector.broadcast %cst_13 : f32 to vector<128x128xf32>
    %19 = arith.mulf %18, %15 : vector<128x128xf32>
    %20 = arith.select %17, %15, %19 : vector<128x128xi1>, vector<128x128xf32>
    %c0_14 = arith.constant 0 : index
    %c0_15 = arith.constant 0 : index
    %21 = vector.load %arg6[%c0_14, %c0_15] : memref<128x1xf32, #tpu.memory_space<vmem>>, vector<128x1xf32>
    %cst_16 = arith.constant dense<0.000000e+00> : vector<128x1xf32>
    %22 = tpu.matmul %20, %21, %cst_16 {dimension_numbers = #tpu.dot_dimension_numbers<[1], [0], [0], [1], [0, 0, 1, 1], [], []>} : vector<128x128xf32>, vector<128x1xf32>, vector<128x1xf32> -> vector<128x1xf32>
    %c0_17 = arith.constant 0 : index
    %23 = memref.load %arg7[%c0_17] : memref<1xf32, #tpu.memory_space<smem>>
    %24 = vector.broadcast %23 : f32 to vector<128x1xf32>
    %25 = arith.addf %22, %24 : vector<128x1xf32>
    %c0_18 = arith.constant 0 : index
    %c0_19 = arith.constant 0 : index
    %26 = vector.load %arg8[%c0_18, %c0_19] : memref<128x1xf32, #tpu.memory_space<vmem>>, vector<128x1xf32>
    tpu.vector_store %arg8[%c0_18, %c0_19], %25 {strides = array<i32>} : memref<128x1xf32, #tpu.memory_space<vmem>>, vector<128x1xf32>,
    return
  }
  func.func @transform_0(%arg0: i32) -> (i32, i32) {
    %c0_i32 = arith.constant 0 : i32
    %c0_i32_0 = arith.constant 0 : i32
    return %arg0, %c0_i32 : i32, i32
  }
  func.func @transform_1(%arg0: i32) -> (i32, i32) {
    %c0_i32 = arith.constant 0 : i32
    %c0_i32_0 = arith.constant 0 : i32
    %c0_i32_1 = arith.constant 0 : i32
    return %c0_i32, %c0_i32_0 : i32, i32
  }
  func.func @transform_2(%arg0: i32) -> (i32, i32) {
    %c0_i32 = arith.constant 0 : i32
    %c0_i32_0 = arith.constant 0 : i32
    %c0_i32_1 = arith.constant 0 : i32
    return %c0_i32, %c0_i32_0 : i32, i32
  }
  func.func @transform_3(%arg0: i32) -> (i32, i32) {
    %c0_i32 = arith.constant 0 : i32
    %c0_i32_0 = arith.constant 0 : i32
    %c0_i32_1 = arith.constant 0 : i32
    return %c0_i32, %c0_i32_0 : i32, i32
  }
  func.func @transform_4(%arg0: i32) -> (i32, i32) {
    %c0_i32 = arith.constant 0 : i32
    %c0_i32_0 = arith.constant 0 : i32
    %c0_i32_1 = arith.constant 0 : i32
    return %c0_i32, %c0_i32_0 : i32, i32
  }
  func.func @transform_5(%arg0: i32) -> (i32, i32) {
    %c0_i32 = arith.constant 0 : i32
    %c0_i32_0 = arith.constant 0 : i32
    %c0_i32_1 = arith.constant 0 : i32
    return %c0_i32, %c0_i32_0 : i32, i32
  }
  func.func @transform_6(%arg0: i32) -> i32 {
    %c0_i32 = arith.constant 0 : i32
    %c0_i32_0 = arith.constant 0 : i32
    return %c0_i32 : i32
  }
  func.func @transform_7(%arg0: i32) -> (i32, i32) {
    %c0_i32 = arith.constant 0 : i32
    %c0_i32_0 = arith.constant 0 : i32
    return %arg0, %c0_i32 : i32, i32
  }
}

</mosaic_0001>

<bundles_post_ra>
// kernel: discriminator_forward.1
= control target key start
LH: loop header
LB: loop body
LE: loop exit
PB: predicated region body
PF: predicated region fallthrough
CT: control target
= control target key end

     0   :  { %vm54_vm0 = vcmask 261120   ;;  %s1381_s1 = inlined_call_operand.vmem [shape: f32[32,128], index: 1, kind: input, shape index: {}]   ;;  %s1382_s0 = inlined_call_operand.vmem [shape: f32[128,32], index: 0, kind: input, shape index: {}]   ;;  %s1383_s3 = inlined_call_operand.vmem [shape: f32[128,128], index: 3, kind: input, shape index: {}]   ;;  %s1384_s5 = inlined_call_operand.vmem [shape: f32[128,1], index: 5, kind: input, shape index: {}]   ;;  %s1385_s2 = inlined_call_operand.vmem [shape: f32[1,128], index: 2, kind: input, shape index: {}]   ;;  %s1386_s4 = inlined_call_operand.vmem [shape: f32[1,128], index: 4, kind: input, shape index: {}]   ;;  %s1387_s6 = inlined_call_operand.<no memory space> [shape: f32[1], index: 6, kind: input, shape index: {}]   ;;  %s1388_s7 = inlined_call_operand.vmem [shape: f32[128,1], index: 7, kind: output, shape index: {}]  }
   0x1   :  { %v43_v0 = vld [vmem:[%s1381_s1] sm:$0xff]  ;;  %v44_v1 = vld [vmem:[%s1381_s1 + $0x8] sm:$0xff]  ;;  %v45_v2 = vld [vmem:[%s1381_s1 + $0x10] sm:$0xff] }
   0x2   :  { %v942_v3 = vpack.c.bf16 %v44_v1, %v43_v0  ;;  %v46_v4 = vld [vmem:[%s1381_s1 + $0x18] sm:$0xff]  ;;  %v27_v5 = vld [vmem:[%s1382_s0] sm:$0xff]  ;;  %v297_v8 = vld [vmem:[%s1383_s3 + $0x8] sm:$0xff] }
   0x3   :  { %v946_v6 = vpack.c.bf16 %v46_v4, %v45_v2  ;;  %806 = vmatprep.mubr.msk.f32.mxu0 %vm54_vm0, %v27_v5  ;;  %v296_v7 = vld [vmem:[%s1383_s3] sm:$0xff]  ;;  %v298_v9 = vld [vmem:[%s1383_s3 + $0x10] sm:$0xff]  ;;  %v299_v10 = vld [vmem:[%s1383_s3 + $0x18] sm:$0xff] }
   0x4   :  { %943 = vmatprep.subr.bf16.mxu0 %v942_v3  ;;  %v28_v11 = vld [vmem:[%s1382_s0 + $0x8] sm:$0xff]  ;;  %v950_v12 = vpack.c.bf16 %v297_v8, %v296_v7  ;;  %v954_v13 = vpack.c.bf16 %v299_v10, %v298_v9  ;;  %v29_v14 = vld [vmem:[%s1382_s0 + $0x10] sm:$0xff]  ;;  %v300_v15 = vld [vmem:[%s1383_s3 + $0x20] sm:$0xff] }
   0x5   :  { %945 = vmatpush3.bf16.msra.mxu0 %v942_v3  ;;  %v301_v16 = vld [vmem:[%s1383_s3 + $0x28] sm:$0xff]  ;;  %v30_v17 = vld [vmem:[%s1382_s0 + $0x18] sm:$0xff]  ;;  %v31_v19 = vld [vmem:[%s1382_s0 + $0x20] sm:$0xff] }
   0x6   :  { %947 = vmatprep.subr.bf16.mxu0 %v946_v6  ;;  %951 = vmatprep.subr.bf16.mxu1 %v950_v12  ;;  %v958_v18 = vpack.c.bf16 %v301_v16, %v300_v15  ;;  %v302_v20 = vld [vmem:[%s1383_s3 + $0x30] sm:$0xff]  ;;  %v303_v21 = vld [vmem:[%s1383_s3 + $0x38] sm:$0xff]  ;;  %v32_v22 = vld [vmem:[%s1382_s0 + $0x28] sm:$0xff] }
   0x7   :  { %953 = vmatpush3.bf16.msra.mxu1 %v950_v12  ;;  %v962_v23 = vpack.c.bf16 %v303_v21, %v302_v20  ;;  %v33_v24 = vld [vmem:[%s1382_s0 + $0x30] sm:$0xff]  ;;  %v304_v25 = vld [vmem:[%s1383_s3 + $0x40] sm:$0xff]  ;;  %v305_v26 = vld [vmem:[%s1383_s3 + $0x48] sm:$0xff] }
   0x8   :  { %955 = vmatprep.subr.bf16.mxu1 %v954_v13  ;;  %v34_v27 = vld [vmem:[%s1382_s0 + $0x38] sm:$0xff]  ;;  %v966_v28 = vpack.c.bf16 %v305_v26, %v304_v25  ;;  %v35_v29 = vld [vmem:[%s1382_s0 + $0x40] sm:$0xff]  ;;  %v306_v30 = vld [vmem:[%s1383_s3 + $0x50] sm:$0xff] }
   0x9   :  { %949 = vmatpush3.bf16.msra.mxu0 %v946_v6  ;;  %v307_v31 = vld [vmem:[%s1383_s3 + $0x58] sm:$0xff]  ;;  %v36_v32 = vld [vmem:[%s1382_s0 + $0x48] sm:$0xff]  ;;  %v37_v34 = vld [vmem:[%s1382_s0 + $0x50] sm:$0xff] }
   0xa   :  { %v970_v33 = vpack.c.bf16 %v307_v31, %v306_v30  ;;  %v38_v35 = vld [vmem:[%s1382_s0 + $0x58] sm:$0xff]  ;;  %v39_v36 = vld [vmem:[%s1382_s0 + $0x60] sm:$0xff]  ;;  %v40_v37 = vld [vmem:[%s1382_s0 + $0x68] sm:$0xff] }
   0xb   :  { %957 = vmatpush3.bf16.msra.mxu1 %v954_v13  ;;  %v41_v38 = vld [vmem:[%s1382_s0 + $0x70] sm:$0xff]  ;;  %v42_v39 = vld [vmem:[%s1382_s0 + $0x78] sm:$0xff]  ;;  %v308_v40 = vld [vmem:[%s1383_s3 + $0x60] sm:$0xff] }
   0xc   :  { %807 = vmatmul.mubr.msk.f32.vlgmr.msra.gmra.mrb[0].mxu0 %vm54_vm0, %v28_v11  ;;  %959 = vmatprep.subr.bf16.mxu1 %v958_v18  ;;  %v309_v41 = vld [vmem:[%s1383_s3 + $0x68] sm:$0xff]  ;;  %v310_v43 = vld [vmem:[%s1383_s3 + $0x70] sm:$0xff]  ;;  %v311_v44 = vld [vmem:[%s1383_s3 + $0x78] sm:$0xff] }
   0xd   :  { %809 = vmatprep.mubr.msk.f32.mxu0 %vm54_vm0, %v29_v14  ;;  %v974_v42 = vpack.c.bf16 %v309_v41, %v308_v40  ;;  %v978_v45 = vpack.c.bf16 %v311_v44, %v310_v43  ;;  %v512_v46 = vld [vmem:[%s1384_s5] sm:$0xff]  ;;  %v513_v47 = vld [vmem:[%s1384_s5 + $0x8] sm:$0xff]  ;;  %v514_v48 = vld [vmem:[%s1384_s5 + $0x10] sm:$0xff] }
   0xe   :  { %v982_v49 = vpack.c.bf16 %v513_v47, %v512_v46  ;;  %v515_v50 = vld [vmem:[%s1384_s5 + $0x18] sm:$0xff]  ;;  %v516_v52 = vld [vmem:[%s1384_s5 + $0x20] sm:$0xff]  ;;  %v517_v53 = vld [vmem:[%s1384_s5 + $0x28] sm:$0xff] }
   0xf   :  { %961 = vmatpush3.bf16.msra.mxu1 %v958_v18  ;;  %v1206_v51 = vpack.c.bf16 %v515_v50, %v514_v48  ;;  %v1215_v54 = vpack.c.bf16 %v517_v53, %v516_v52  ;;  %v518_v55 = vld [vmem:[%s1384_s5 + $0x30] sm:$0xff]  ;;  %v519_v56 = vld [vmem:[%s1384_s5 + $0x38] sm:$0xff]  ;;  %v520_v58 = vld [vmem:[%s1384_s5 + $0x40] sm:$0xff] }
  0x10   :  { %810 = vmatmul.mubr.msk.f32.gmra.mrb[2].mxu0 %vm54_vm0, %v30_v17  ;;  %963 = vmatprep.subr.bf16.mxu1 %v962_v23  ;;  %v1225_v57 = vpack.c.bf16 %v519_v56, %v518_v55  ;;  %v521_v59 = vld [vmem:[%s1384_s5 + $0x48] sm:$0xff]  ;;  %v522_v61 = vld [vmem:[%s1384_s5 + $0x50] sm:$0xff]  ;;  %v523_v62 = vld [vmem:[%s1384_s5 + $0x58] sm:$0xff] }
  0x11   :  { %812 = vmatprep.mubr.msk.f32.mxu0 %vm54_vm0, %v31_v19  ;;  %983 = vmatprep.subr.bf16.mxu0 %v982_v49  ;;  %v1235_v60 = vpack.c.bf16 %v521_v59, %v520_v58  ;;  %v1245_v63 = vpack.c.bf16 %v523_v62, %v522_v61  ;;  %v1253_v0 = vld [vmem:[%s1385_s2] ss:$0 sm:$0xff] }
  0x12   :  { %985 = vmatpush3.bf16.msra.mxu0 %v982_v49 }
  0x13   :  { %965 = vmatpush3.bf16.msra.mxu1 %v962_v23  ;;  %987 = vmatprep.subr.bf16.mxu0 %v1206_v51 }
  0x14   :  { %813 = vmatmul.mubr.msk.f32.gmra.mrb[4].mxu0 %vm54_vm0, %v32_v22  ;;  %967 = vmatprep.subr.bf16.mxu1 %v966_v28 }
  0x15   :  { %815 = vmatprep.mubr.msk.f32.mxu0 %vm54_vm0, %v33_v24 }
  0x16   :  { %989 = vmatpush3.bf16.msra.mxu0 %v1206_v51 }
  0x17   :  { %969 = vmatpush3.bf16.msra.mxu1 %v966_v28  ;;  %991 = vmatprep.subr.bf16.mxu0 %v1215_v54 }
  0x18   :  { %816 = vmatmul.mubr.msk.f32.gmra.mrb[6].mxu0 %vm54_vm0, %v34_v27  ;;  %971 = vmatprep.subr.bf16.mxu1 %v970_v33 }
  0x19   :  { %818 = vmatprep.mubr.msk.f32.mxu0 %vm54_vm0, %v35_v29 }
  0x1a   :  { %993 = vmatpush3.bf16.msra.mxu0 %v1215_v54 }
  0x1b   :  { %973 = vmatpush3.bf16.msra.mxu1 %v970_v33  ;;  %995 = vmatprep.subr.bf16.mxu0 %v1225_v57 }
  0x1c   :  { %819 = vmatmul.mubr.msk.f32.gmra.mrb[8].mxu0 %vm54_vm0, %v36_v32  ;;  %975 = vmatprep.subr.bf16.mxu1 %v974_v42 }
  0x1d   :  { %821 = vmatprep.mubr.msk.f32.mxu0 %vm54_vm0, %v37_v34 }
  0x1e   :  { %997 = vmatpush3.bf16.msra.mxu0 %v1225_v57 }
  0x1f   :  { %977 = vmatpush3.bf16.msra.mxu1 %v974_v42  ;;  %999 = vmatprep.subr.bf16.mxu0 %v1235_v60 }
  0x20   :  { %822 = vmatmul.mubr.msk.f32.gmra.mrb[10].mxu0 %vm54_vm0, %v38_v35  ;;  %979 = vmatprep.subr.bf16.mxu1 %v978_v45 }
  0x21   :  { %824 = vmatprep.mubr.msk.f32.mxu0 %vm54_vm0, %v39_v36 }
  0x22   :  { %1001 = vmatpush3.bf16.msra.mxu0 %v1235_v60 }
  0x23   :  { %981 = vmatpush3.bf16.msra.mxu1 %v978_v45  ;;  %1003 = vmatprep.subr.bf16.mxu0 %v1245_v63 }
  0x24   :  { %825 = vmatmul.mubr.msk.f32.gmra.mrb[12].mxu0 %vm54_vm0, %v40_v37  ;;  %1014 = vmatprep.subr.bf16.mxu1 %v982_v49 }
  0x25   :  { %827 = vmatprep.mubr.msk.f32.mxu0 %vm54_vm0, %v41_v38 }
  0x26   :  { %1005 = vmatpush3.bf16.msra.mxu0 %v1245_v63 }
  0x28   :  { %828 = vmatmul.mubr.msk.f32.gmra.mrb[14].mxu0 %vm54_vm0, %v42_v39 }
  0xdf   :  { %v808_v1 = vpop.f32.mrb[0].mxu0 }
  0xe0   :  { %v175_v2 = vadd.f32 %v808_v1, %v1253_v0  ;;  %v169_v3 = vpop.f32.mrb[1].mxu0 }
  0xe1   :  { %v170_v4 = vadd.f32 %v1253_v0, %v169_v3  ;;  %v524_v3 = vld [vmem:[%s1384_s5 + $0x60] sm:$0xff] }
  0xe2   :  { %v265_v5 = vmul.f32 0.1, %v175_v2  ;;  %vm249_vm2 = vcmp.gt.f32.partialorder %v175_v2, 0.0 }
  0xe3   :  { %v811_v6 = vpop.f32.mrb[2].mxu0  ;;  %vm248_vm1 = vcmp.gt.f32.partialorder %v170_v4, 0.0  ;;  %v264_v7 = vmul.f32 0.1, %v170_v4 }
  0xe4   :  { %v185_v8 = vadd.f32 %v811_v6, %v1253_v0  ;;  %v179_v9 = vpop.f32.mrb[3].mxu0  ;;  %v281_v13 = vsel %vm249_vm2, %v175_v2, %v265_v5  ;;  %v527_v5 = vld [vmem:[%s1384_s5 + $0x78] sm:$0xff] }
  0xe5   :  { %v180_v10 = vadd.f32 %v1253_v0, %v179_v9  ;;  %v280_v11 = vsel %vm248_vm1, %v170_v4, %v264_v7  ;;  %v526_v4 = vld [vmem:[%s1384_s5 + $0x70] sm:$0xff]  ;;  %v1296_v7 = vld [vmem:[%s1386_s4] ss:$0 sm:$0xff] }
  0xe6   :  { %v267_v12 = vmul.f32 0.1, %v185_v8  ;;  %862 = vmatprep.mubr.f32.mxu1 %v280_v11  ;;  %vm251_vm4 = vcmp.gt.f32.partialorder %v185_v8, 0.0  ;;  %v1010_v6 = vpack.c.bf16 %v527_v5, %v526_v4 }
  0xe7   :  { %v266_v14 = vmul.f32 0.1, %v180_v10  ;;  %v814_v15 = vpop.f32.mrb[4].mxu0  ;;  %863 = vmatmul.mubr.f32.vlgmr.msra.gmra.mrb[0].mxu1 %v281_v13  ;;  %vm250_vm3 = vcmp.gt.f32.partialorder %v180_v10, 0.0 }
  0xe8   :  { %v195_v16 = vadd.f32 %v814_v15, %v1253_v0  ;;  %v189_v17 = vpop.f32.mrb[5].mxu0  ;;  %1022 = vmatpush3.bf16.msra.mxu1 %v982_v49  ;;  %v283_v21 = vsel %vm251_vm4, %v185_v8, %v267_v12 }
  0xe9   :  { %v190_v18 = vadd.f32 %v1253_v0, %v189_v17  ;;  %v282_v19 = vsel %vm250_vm3, %v180_v10, %v266_v14  ;;  %1015 = vmatprep.subr.bf16.mxu1 %v1206_v51 }
  0xea   :  { %v269_v20 = vmul.f32 0.1, %v195_v16  ;;  %865 = vmatprep.mubr.f32.mxu1 %v282_v19  ;;  %vm253_vm6 = vcmp.gt.f32.partialorder %v195_v16, 0.0 }
  0xeb   :  { %v268_v22 = vmul.f32 0.1, %v190_v18  ;;  %v817_v23 = vpop.f32.mrb[6].mxu0  ;;  %866 = vmatmul.mubr.f32.gmra.mrb[2].mxu1 %v283_v21  ;;  %vm252_vm5 = vcmp.gt.f32.partialorder %v190_v18, 0.0 }
  0xec   :  { %v205_v24 = vadd.f32 %v817_v23, %v1253_v0  ;;  %v199_v25 = vpop.f32.mrb[7].mxu0  ;;  %1023 = vmatpush3.bf16.msra.mxu1 %v1206_v51  ;;  %v285_v29 = vsel %vm253_vm6, %v195_v16, %v269_v20 }
  0xed   :  { %v200_v26 = vadd.f32 %v1253_v0, %v199_v25  ;;  %v284_v27 = vsel %vm252_vm5, %v190_v18, %v268_v22  ;;  %1016 = vmatprep.subr.bf16.mxu1 %v1215_v54 }
  0xee   :  { %v271_v28 = vmul.f32 0.1, %v205_v24  ;;  %868 = vmatprep.mubr.f32.mxu1 %v284_v27  ;;  %vm255_vm8 = vcmp.gt.f32.partialorder %v205_v24, 0.0 }
  0xef   :  { %v270_v30 = vmul.f32 0.1, %v200_v26  ;;  %v820_v31 = vpop.f32.mrb[8].mxu0  ;;  %869 = vmatmul.mubr.f32.gmra.mrb[4].mxu1 %v285_v29  ;;  %vm254_vm7 = vcmp.gt.f32.partialorder %v200_v26, 0.0 }
  0xf0   :  { %v215_v32 = vadd.f32 %v820_v31, %v1253_v0  ;;  %v209_v33 = vpop.f32.mrb[9].mxu0  ;;  %1024 = vmatpush3.bf16.msra.mxu1 %v1215_v54  ;;  %v287_v37 = vsel %vm255_vm8, %v205_v24, %v271_v28 }
  0xf1   :  { %v210_v34 = vadd.f32 %v1253_v0, %v209_v33  ;;  %v286_v35 = vsel %vm254_vm7, %v200_v26, %v270_v30  ;;  %1017 = vmatprep.subr.bf16.mxu1 %v1225_v57 }
  0xf2   :  { %v273_v36 = vmul.f32 0.1, %v215_v32  ;;  %871 = vmatprep.mubr.f32.mxu1 %v286_v35  ;;  %vm257_vm10 = vcmp.gt.f32.partialorder %v215_v32, 0.0 }
  0xf3   :  { %v272_v38 = vmul.f32 0.1, %v210_v34  ;;  %v823_v39 = vpop.f32.mrb[10].mxu0  ;;  %872 = vmatmul.mubr.f32.gmra.mrb[6].mxu1 %v287_v37  ;;  %vm256_vm9 = vcmp.gt.f32.partialorder %v210_v34, 0.0 }
  0xf4   :  { %v225_v40 = vadd.f32 %v823_v39, %v1253_v0  ;;  %v219_v41 = vpop.f32.mrb[11].mxu0  ;;  %1025 = vmatpush3.bf16.msra.mxu1 %v1225_v57  ;;  %v289_v45 = vsel %vm257_vm10, %v215_v32, %v273_v36 }
  0xf5   :  { %v220_v42 = vadd.f32 %v1253_v0, %v219_v41  ;;  %v288_v43 = vsel %vm256_vm9, %v210_v34, %v272_v38  ;;  %1018 = vmatprep.subr.bf16.mxu1 %v1235_v60 }
  0xf6   :  { %v275_v44 = vmul.f32 0.1, %v225_v40  ;;  %874 = vmatprep.mubr.f32.mxu1 %v288_v43  ;;  %vm259_vm12 = vcmp.gt.f32.partialorder %v225_v40, 0.0 }
  0xf7   :  { %v274_v46 = vmul.f32 0.1, %v220_v42  ;;  %v826_v47 = vpop.f32.mrb[12].mxu0  ;;  %875 = vmatmul.mubr.f32.gmra.mrb[8].mxu1 %v289_v45  ;;  %vm258_vm11 = vcmp.gt.f32.partialorder %v220_v42, 0.0 }
  0xf8   :  { %v235_v48 = vadd.f32 %v826_v47, %v1253_v0  ;;  %v229_v49 = vpop.f32.mrb[13].mxu0  ;;  %1026 = vmatpush3.bf16.msra.mxu1 %v1235_v60  ;;  %v291_v53 = vsel %vm259_vm12, %v225_v40, %v275_v44 }
  0xf9   :  { %v230_v50 = vadd.f32 %v1253_v0, %v229_v49  ;;  %v290_v51 = vsel %vm258_vm11, %v220_v42, %v274_v46  ;;  %1019 = vmatprep.subr.bf16.mxu1 %v1245_v63 }
  0xfa   :  { %v277_v52 = vmul.f32 0.1, %v235_v48  ;;  %877 = vmatprep.mubr.f32.mxu1 %v290_v51  ;;  %vm261_vm14 = vcmp.gt.f32.partialorder %v235_v48, 0.0 }
  0xfb   :  { %v276_v54 = vmul.f32 0.1, %v230_v50  ;;  %v829_v55 = vpop.f32.mrb[14].mxu0  ;;  %878 = vmatmul.mubr.f32.gmra.mrb[10].mxu1 %v291_v53  ;;  %vm260_vm13 = vcmp.gt.f32.partialorder %v230_v50, 0.0 }
  0xfc   :  { %v245_v56 = vadd.f32 %v829_v55, %v1253_v0  ;;  %v239_v57 = vpop.f32.mrb[15].mxu0  ;;  %1027 = vmatpush3.bf16.msra.mxu1 %v1245_v63  ;;  %v293_v61 = vsel %vm261_vm14, %v235_v48, %v277_v52  ;;  %v525_v63 = vld [vmem:[%s1384_s5 + $0x68] sm:$0xff] }
  0xfd   :  { %v240_v58 = vadd.f32 %v1253_v0, %v239_v57  ;;  %v292_v59 = vsel %vm260_vm13, %v230_v50, %v276_v54  ;;  %v1006_v0 = vpack.c.bf16 %v525_v63, %v524_v3 }
  0xfe   :  { %v279_v60 = vmul.f32 0.1, %v245_v56  ;;  %880 = vmatprep.mubr.f32.mxu1 %v292_v59  ;;  %vm263_vm0 = vcmp.gt.f32.partialorder %v245_v56, 0.0 }
  0xff   :  { %v278_v62 = vmul.f32 0.1, %v240_v58  ;;  %881 = vmatmul.mubr.f32.gmra.mrb[12].mxu1 %v293_v61  ;;  %vm262_vm15 = vcmp.gt.f32.partialorder %v240_v58, 0.0  ;;  %1007 = vmatprep.subr.bf16.mxu0 %v1006_v0 }
 0x100   :  { %v295_v2 = vsel %vm263_vm0, %v245_v56, %v279_v60  ;;  %1020 = vmatprep.subr.bf16.mxu1 %v1006_v0  ;;  %1009 = vmatpush3.bf16.msra.mxu0 %v1006_v0 }
 0x101   :  { %v294_v1 = vsel %vm262_vm15, %v240_v58, %v278_v62  ;;  %1028 = vmatpush3.bf16.msra.mxu1 %v1006_v0  ;;  %1011 = vmatprep.subr.bf16.mxu0 %v1010_v6 }
 0x102   :  { %883 = vmatprep.mubr.f32.mxu1 %v294_v1  ;;  %1021 = vmatprep.subr.bf16.mxu1 %v1010_v6 }
 0x103   :  { %884 = vmatmul.mubr.f32.gmra.mrb[14].mxu1 %v295_v2 }
 0x104   :  { %1013 = vmatpush3.bf16.msra.mxu0 %v1010_v6 }
 0x105   :  { %1029 = vmatpush3.bf16.msra.mxu1 %v1010_v6 }
 0x1ba   :  { %v864_v8 = vpop.f32.mrb[0].mxu1 }
 0x1bb   :  { %v391_v9 = vadd.f32 %v864_v8, %v1296_v7  ;;  %v385_v10 = vpop.f32.mrb[1].mxu1 }
 0x1bc   :  { %v386_v11 = vadd.f32 %v1296_v7, %v385_v10 }
 0x1bd   :  { %v481_v12 = vmul.f32 0.1, %v391_v9  ;;  %vm465_vm1 = vcmp.gt.f32.partialorder %v391_v9, 0.0 }
 0x1be   :  { %v480_v13 = vmul.f32 0.1, %v386_v11  ;;  %v867_v14 = vpop.f32.mrb[2].mxu1  ;;  %vm464_vm2 = vcmp.gt.f32.partialorder %v386_v11, 0.0 }
 0x1bf   :  { %v401_v15 = vadd.f32 %v867_v14, %v1296_v7  ;;  %v395_v16 = vpop.f32.mrb[3].mxu1  ;;  %v497_v19 = vsel %vm465_vm1, %v391_v9, %v481_v12  ;;  %v529_v9 = vstv %s1387_s6  ;;  %vm675_vm1 = vcmask 7168  }
 0x1c0   :  { %v396_v17 = vadd.f32 %v1296_v7, %v395_v16  ;;  %v496_v18 = vsel %vm464_vm2, %v386_v11, %v480_v13 }
 0x1c1   :  { %v483_v20 = vmul.f32 0.1, %v401_v15  ;;  %918 = vmatprep.mubr.f32.mxu0 %v496_v18  ;;  %vm467_vm4 = vcmp.gt.f32.partialorder %v401_v15, 0.0 }
 0x1c2   :  { %v482_v21 = vmul.f32 0.1, %v396_v17  ;;  %v870_v22 = vpop.f32.mrb[4].mxu1  ;;  %919 = vmatmul.mubr.f32.vlgmr.msra.gmra.mrb[16].mxu0 %v497_v19  ;;  %vm466_vm3 = vcmp.gt.f32.partialorder %v396_v17, 0.0 }
 0x1c3   :  { %v411_v23 = vadd.f32 %v870_v22, %v1296_v7  ;;  %v405_v24 = vpop.f32.mrb[5].mxu1  ;;  %v499_v28 = vsel %vm467_vm4, %v401_v15, %v483_v20 }
 0x1c4   :  { %v406_v25 = vadd.f32 %v1296_v7, %v405_v24  ;;  %v498_v26 = vsel %vm466_vm3, %v396_v17, %v482_v21 }
 0x1c5   :  { %v485_v27 = vmul.f32 0.1, %v411_v23  ;;  %921 = vmatprep.mubr.f32.mxu0 %v498_v26  ;;  %vm469_vm6 = vcmp.gt.f32.partialorder %v411_v23, 0.0 }
 0x1c6   :  { %v484_v29 = vmul.f32 0.1, %v406_v25  ;;  %v873_v30 = vpop.f32.mrb[6].mxu1  ;;  %922 = vmatmul.mubr.f32.gmra.mrb[18].mxu0 %v499_v28  ;;  %vm468_vm5 = vcmp.gt.f32.partialorder %v406_v25, 0.0 }
 0x1c7   :  { %v421_v31 = vadd.f32 %v873_v30, %v1296_v7  ;;  %v415_v32 = vpop.f32.mrb[7].mxu1  ;;  %v501_v36 = vsel %vm469_vm6, %v411_v23, %v485_v27 }
 0x1c8   :  { %v416_v33 = vadd.f32 %v1296_v7, %v415_v32  ;;  %v500_v34 = vsel %vm468_vm5, %v406_v25, %v484_v29 }
 0x1c9   :  { %v487_v35 = vmul.f32 0.1, %v421_v31  ;;  %924 = vmatprep.mubr.f32.mxu0 %v500_v34  ;;  %vm471_vm8 = vcmp.gt.f32.partialorder %v421_v31, 0.0 }
 0x1ca   :  { %v486_v37 = vmul.f32 0.1, %v416_v33  ;;  %v876_v38 = vpop.f32.mrb[8].mxu1  ;;  %925 = vmatmul.mubr.f32.gmra.mrb[20].mxu0 %v501_v36  ;;  %vm470_vm7 = vcmp.gt.f32.partialorder %v416_v33, 0.0 }
 0x1cb   :  { %v431_v39 = vadd.f32 %v876_v38, %v1296_v7  ;;  %v425_v40 = vpop.f32.mrb[9].mxu1  ;;  %v503_v44 = vsel %vm471_vm8, %v421_v31, %v487_v35 }
 0x1cc   :  { %v426_v41 = vadd.f32 %v1296_v7, %v425_v40  ;;  %v502_v42 = vsel %vm470_vm7, %v416_v33, %v486_v37 }
 0x1cd   :  { %v489_v43 = vmul.f32 0.1, %v431_v39  ;;  %927 = vmatprep.mubr.f32.mxu0 %v502_v42  ;;  %vm473_vm10 = vcmp.gt.f32.partialorder %v431_v39, 0.0 }
 0x1ce   :  { %v488_v45 = vmul.f32 0.1, %v426_v41  ;;  %v879_v46 = vpop.f32.mrb[10].mxu1  ;;  %928 = vmatmul.mubr.f32.gmra.mrb[22].mxu0 %v503_v44  ;;  %vm472_vm9 = vcmp.gt.f32.partialorder %v426_v41, 0.0 }
 0x1cf   :  { %v441_v47 = vadd.f32 %v879_v46, %v1296_v7  ;;  %v435_v48 = vpop.f32.mrb[11].mxu1  ;;  %v505_v52 = vsel %vm473_vm10, %v431_v39, %v489_v43 }
 0x1d0   :  { %v436_v49 = vadd.f32 %v1296_v7, %v435_v48  ;;  %v504_v50 = vsel %vm472_vm9, %v426_v41, %v488_v45 }
 0x1d1   :  { %v491_v51 = vmul.f32 0.1, %v441_v47  ;;  %930 = vmatprep.mubr.f32.mxu0 %v504_v50  ;;  %vm475_vm12 = vcmp.gt.f32.partialorder %v441_v47, 0.0 }
 0x1d2   :  { %v490_v53 = vmul.f32 0.1, %v436_v49  ;;  %v882_v54 = vpop.f32.mrb[12].mxu1  ;;  %931 = vmatmul.mubr.f32.gmra.mrb[24].mxu0 %v505_v52  ;;  %vm474_vm11 = vcmp.gt.f32.partialorder %v436_v49, 0.0 }
 0x1d3   :  { %v451_v55 = vadd.f32 %v882_v54, %v1296_v7  ;;  %v445_v56 = vpop.f32.mrb[13].mxu1  ;;  %v507_v60 = vsel %vm475_vm12, %v441_v47, %v491_v51 }
 0x1d4   :  { %v446_v57 = vadd.f32 %v1296_v7, %v445_v56  ;;  %v506_v58 = vsel %vm474_vm11, %v436_v49, %v490_v53 }
 0x1d5   :  { %v493_v59 = vmul.f32 0.1, %v451_v55  ;;  %933 = vmatprep.mubr.f32.mxu0 %v506_v58  ;;  %vm477_vm14 = vcmp.gt.f32.partialorder %v451_v55, 0.0 }
 0x1d6   :  { %v492_v61 = vmul.f32 0.1, %v446_v57  ;;  %v885_v62 = vpop.f32.mrb[14].mxu1  ;;  %934 = vmatmul.mubr.f32.gmra.mrb[26].mxu0 %v507_v60  ;;  %vm476_vm13 = vcmp.gt.f32.partialorder %v446_v57, 0.0 }
 0x1d7   :  { %v461_v1 = vadd.f32 %v885_v62, %v1296_v7  ;;  %v455_v2 = vpop.f32.mrb[15].mxu1  ;;  %v509_v4 = vsel %vm477_vm14, %v451_v55, %v493_v59 }
 0x1d8   :  { %v456_v3 = vadd.f32 %v1296_v7, %v455_v2  ;;  %v508_v63 = vsel %vm476_vm13, %v446_v57, %v492_v61 }
 0x1d9   :  { %v495_v0 = vmul.f32 0.1, %v461_v1  ;;  %936 = vmatprep.mubr.f32.mxu0 %v508_v63  ;;  %vm479_vm15 = vcmp.gt.f32.partialorder %v461_v1, 0.0 }
 0x1da   :  { %v494_v5 = vmul.f32 0.1, %v456_v3  ;;  %937 = vmatmul.mubr.f32.gmra.mrb[28].mxu0 %v509_v4  ;;  %vm478_vm0 = vcmp.gt.f32.partialorder %v456_v3, 0.0 }
 0x1db   :  { %v511_v8 = vsel %vm479_vm15, %v461_v1, %v495_v0 }
 0x1dc   :  { %v510_v6 = vsel %vm478_vm0, %v456_v3, %v494_v5 }
 0x1dd   :  { %939 = vmatprep.mubr.f32.mxu1 %v510_v6 }
 0x1de   :  { %940 = vmatmul.mubr.f32.vlgmr.msra.gmra.mrb[16].mxu1 %v511_v8 }
 0x295   :  { %v920_v10 = vpop.f32.mrb[16].mxu0 }
 0x296   :  { %v602_v11 = vadd.f32 %v920_v10, %v529_v9  ;;  %v596_v7 = vpop.f32.mrb[17].mxu0 }
 0x297   :  { %v597_v12 = vadd.f32 %v596_v7, %v529_v9 }
 0x298   :  { %677 = vst.msk [vmem:[%s1388_s7 + $0x8] sm:$0xff] %vm675_vm1, %v602_v11 }
 0x299   :  { %676 = vst.msk [vmem:[%s1388_s7] sm:$0xff] %vm675_vm1, %v597_v12  ;;  %v923_v13 = vpop.f32.mrb[18].mxu0 }
 0x29a   :  { %v612_v14 = vadd.f32 %v923_v13, %v529_v9  ;;  %v606_v15 = vpop.f32.mrb[19].mxu0 }
 0x29b   :  { %v607_v16 = vadd.f32 %v606_v15, %v529_v9 }
 0x29c   :  { %679 = vst.msk [vmem:[%s1388_s7 + $0x18] sm:$0xff] %vm675_vm1, %v612_v14 }
 0x29d   :  { %678 = vst.msk [vmem:[%s1388_s7 + $0x10] sm:$0xff] %vm675_vm1, %v607_v16  ;;  %v926_v17 = vpop.f32.mrb[20].mxu0 }
 0x29e   :  { %v622_v18 = vadd.f32 %v926_v17, %v529_v9  ;;  %v616_v19 = vpop.f32.mrb[21].mxu0 }
 0x29f   :  { %v617_v20 = vadd.f32 %v616_v19, %v529_v9 }
 0x2a0   :  { %681 = vst.msk [vmem:[%s1388_s7 + $0x28] sm:$0xff] %vm675_vm1, %v622_v18 }
 0x2a1   :  { %680 = vst.msk [vmem:[%s1388_s7 + $0x20] sm:$0xff] %vm675_vm1, %v617_v20  ;;  %v929_v21 = vpop.f32.mrb[22].mxu0 }
 0x2a2   :  { %v632_v22 = vadd.f32 %v929_v21, %v529_v9  ;;  %v626_v23 = vpop.f32.mrb[23].mxu0 }
 0x2a3   :  { %v627_v24 = vadd.f32 %v626_v23, %v529_v9 }
 0x2a4   :  { %683 = vst.msk [vmem:[%s1388_s7 + $0x38] sm:$0xff] %vm675_vm1, %v632_v22 }
 0x2a5   :  { %682 = vst.msk [vmem:[%s1388_s7 + $0x30] sm:$0xff] %vm675_vm1, %v627_v24  ;;  %v932_v25 = vpop.f32.mrb[24].mxu0 }
 0x2a6   :  { %v642_v26 = vadd.f32 %v932_v25, %v529_v9  ;;  %v636_v27 = vpop.f32.mrb[25].mxu0 }
 0x2a7   :  { %v637_v28 = vadd.f32 %v636_v27, %v529_v9 }
 0x2a8   :  { %685 = vst.msk [vmem:[%s1388_s7 + $0x48] sm:$0xff] %vm675_vm1, %v642_v26 }
 0x2a9   :  { %684 = vst.msk [vmem:[%s1388_s7 + $0x40] sm:$0xff] %vm675_vm1, %v637_v28  ;;  %v935_v29 = vpop.f32.mrb[26].mxu0 }
 0x2aa   :  { %v652_v30 = vadd.f32 %v935_v29, %v529_v9  ;;  %v646_v31 = vpop.f32.mrb[27].mxu0 }
 0x2ab   :  { %v647_v32 = vadd.f32 %v646_v31, %v529_v9 }
 0x2ac   :  { %687 = vst.msk [vmem:[%s1388_s7 + $0x58] sm:$0xff] %vm675_vm1, %v652_v30 }
 0x2ad   :  { %686 = vst.msk [vmem:[%s1388_s7 + $0x50] sm:$0xff] %vm675_vm1, %v647_v32  ;;  %v938_v33 = vpop.f32.mrb[28].mxu0 }
 0x2ae   :  { %v662_v34 = vadd.f32 %v938_v33, %v529_v9  ;;  %v656_v35 = vpop.f32.mrb[29].mxu0 }
 0x2af   :  { %v657_v36 = vadd.f32 %v656_v35, %v529_v9 }
 0x2b0   :  { %689 = vst.msk [vmem:[%s1388_s7 + $0x68] sm:$0xff] %vm675_vm1, %v662_v34 }
 0x2b1   :  { %688 = vst.msk [vmem:[%s1388_s7 + $0x60] sm:$0xff] %vm675_vm1, %v657_v36  ;;  %v941_v37 = vpop.f32.mrb[16].mxu1 }
 0x2b2   :  { %v672_v38 = vadd.f32 %v941_v37, %v529_v9  ;;  %v666_v39 = vpop.f32.mrb[17].mxu1 }
 0x2b3   :  { %v667_v40 = vadd.f32 %v666_v39, %v529_v9 }
 0x2b4   :  { %691 = vst.msk [vmem:[%s1388_s7 + $0x78] sm:$0xff] %vm675_vm1, %v672_v38 }
 0x2b5   :  { %690 = vst.msk [vmem:[%s1388_s7 + $0x70] sm:$0xff] %vm675_vm1, %v667_v40 }

</bundles_post_ra>
